<compile_context>
chip_gen: v6e
topology: v6e:2x2x1
jax: 0.10.0
libtpu: 0.0.40
codegen_flags: <defaults>
</compile_context>

<pallas_src>
import math

import jax
import jax.numpy as jnp
from jax.experimental import pallas as pl
from jax.experimental.pallas import tpu as pltpu

GRID_SIZE = (10, 10)
INPUT_DIM = GRID_SIZE[0] * GRID_SIZE[1]   # 100
HIDDEN_DIM = 128
OUTPUT_DIM = 4                            # small action space for the demo


def _vmem_limit_bytes():
    """Generation-aware scoped-VMEM limit (v7x has only 64 MiB physical)."""
    try:
        cap = pltpu.get_tpu_info().vmem_capacity_bytes
        return int(min(cap // 2, 64 * 1024 * 1024))
    except Exception:
        return 32 * 1024 * 1024


def _qnetwork_kernel(x_ref, w1_ref, b1_ref, w2_ref, b2_ref, w3_ref, b3_ref,
                     out_ref):
    """One batch tile, fully in VMEM: fc1+relu -> fc2+relu -> fc3."""
    # Cast to the weight dtype in VMEM (free vs. HBM); MXU accumulates in f32.
    x = x_ref[...].astype(w1_ref.dtype)                                 # [TB, 100]

    h1 = jnp.dot(x, w1_ref[...], preferred_element_type=jnp.float32)   # [TB, 128]
    h1 = jnp.maximum(h1 + b1_ref[...], 0.0)

    h2 = jnp.dot(h1.astype(w2_ref.dtype), w2_ref[...],
                 preferred_element_type=jnp.float32)                   # [TB, 128]
    h2 = jnp.maximum(h2 + b2_ref[...], 0.0)

    out = jnp.dot(h2.astype(w3_ref.dtype), w3_ref[...],
                  preferred_element_type=jnp.float32)                   # [TB, 8]
    out_ref[...] = (out + b3_ref[...]).astype(out_ref.dtype)


def prepare_params(params, compute_dtype=jnp.bfloat16):
    """One-time cast/pad of the weights (cache the result; do NOT call per step).

    Weights go to `compute_dtype` (bf16 default — halves weight traffic and matches
    the MXU's native operand type on all generations).  Biases stay f32.  fc3 is
    lane-padded 4 -> 8 (zero columns) so the output block stays 8-lane aligned
    without paying for 128 padded lanes of write traffic.
    """
    out_dim = params["w3"].shape[1]
    pad_out = max(8, -(-out_dim // 8) * 8)

    w3 = jnp.zeros((params["w3"].shape[0], pad_out), compute_dtype)
    w3 = w3.at[:, :out_dim].set(params["w3"].astype(compute_dtype))
    b3 = jnp.zeros((1, pad_out), jnp.float32)
    b3 = b3.at[:, :out_dim].set(params["b3"].reshape(1, -1).astype(jnp.float32))

    return {
        "w1": params["w1"].astype(compute_dtype),                 # [100, 128]
        "b1": params["b1"].reshape(1, -1).astype(jnp.float32),    # [1, 128]
        "w2": params["w2"].astype(compute_dtype),                 # [128, 128]
        "b2": params["b2"].reshape(1, -1).astype(jnp.float32),    # [1, 128]
        "w3": w3,                                                 # [128, 8]
        "b3": b3,                                                 # [1, 8]
        "out_dim": out_dim,
    }


def qnetwork_forward(x, prepared, *, block_b=2048):
    """x: [B, INPUT_DIM] (f32 or bf16).  prepared: output of prepare_params().

    block_b: target batch tile (rows per grid step).  2048 amortizes the ~0.35 µs
    per-step overhead; sweep 2048-8192 for very large batches.  Automatically
    clamped for small batches and for the scoped VMEM limit.
    """
    w1, b1, w2, b2, w3, b3 = (prepared[k]
                              for k in ("w1", "b1", "w2", "b2", "w3", "b3"))
    out_dim = prepared["out_dim"]

    B, f_in = x.shape
    hidden = w1.shape[1]
    pad_out = w3.shape[1]
    assert f_in == w1.shape[0], (f_in, w1.shape)

    vmem_limit = _vmem_limit_bytes()
    x_itemsize = jnp.dtype(x.dtype).itemsize

    # ---- pick the batch tile ----
    block_b = max(8, (block_b // 8) * 8)
    b_pad8 = max(8, -(-B // 8) * 8)
    tb = min(block_b, b_pad8)
    # v7x: guarantee >= 2 grid steps when there are >= 2 tiles worth of rows, so the
    # "parallel" batch axis can shard across both TensorCores.
    if tb == b_pad8 and b_pad8 >= 16:
        tb = -(-(b_pad8 // 2) // 8) * 8
    # Keep the double-buffered x/out tiles well under the scoped VMEM limit.
    row_bytes = 2 * (f_in * x_itemsize + pad_out * 4)
    max_tb = max(8, ((vmem_limit // 2) // row_bytes) // 8 * 8)
    tb = max(8, min(tb, max_tb))
    b_padded = -(-B // tb) * tb

    # ---- only pad rows (never columns), and only when actually needed ----
    if b_padded == B:
        x_in = x
    else:
        x_in = jnp.zeros((b_padded, f_in), x.dtype).at[:B].set(x)

    n_w = f_in * hidden + hidden * hidden + hidden * pad_out
    w_itemsize = jnp.dtype(w1.dtype).itemsize
    cost = pl.CostEstimate(
        flops=2 * b_padded * n_w,
        transcendentals=0,
        bytes_accessed=(b_padded * f_in * x_itemsize      # x in
                        + n_w * w_itemsize                # weights
                        + (2 * hidden + pad_out) * 4      # biases
                        + b_padded * pad_out * 4),        # out
    )

    out_padded = pl.pallas_call(
        _qnetwork_kernel,
        out_shape=jax.ShapeDtypeStruct((b_padded, pad_out), jnp.float32),
        grid=(b_padded // tb,),
        in_specs=[
            pl.BlockSpec((tb, f_in), lambda i: (i, 0)),               # x tile
            pl.BlockSpec((f_in, hidden), lambda i: (0, 0)),           # w1 (resident)
            pl.BlockSpec((1, hidden), lambda i: (0, 0)),              # b1
            pl.BlockSpec((hidden, hidden), lambda i: (0, 0)),         # w2
            pl.BlockSpec((1, hidden), lambda i: (0, 0)),              # b2
            pl.BlockSpec((hidden, pad_out), lambda i: (0, 0)),        # w3
            pl.BlockSpec((1, pad_out), lambda i: (0, 0)),             # b3
        ],
        out_specs=pl.BlockSpec((tb, pad_out), lambda i: (i, 0)),
        compiler_params=pltpu.CompilerParams(
            dimension_semantics=("parallel",),            # batch axis -> 2 TCs on v7x
            vmem_limit_bytes=vmem_limit,
        ),
        cost_estimate=cost,
    )(x_in, w1, b1, w2, b2, w3, b3)

    return out_padded[:B, :out_dim]


def init_params(key, input_dim=INPUT_DIM, hidden=HIDDEN_DIM,
                output_dim=OUTPUT_DIM):
    """Deterministic init mimicking PyTorch Linear's U(-1/sqrt(fan_in), +)."""
    ks = jax.random.split(key, 6)

    def linear(kw, kb, fan_in, fan_out):
        bound = 1.0 / math.sqrt(fan_in)
        # stored transposed: [fan_in, fan_out]
        w = jax.random.uniform(kw, (fan_in, fan_out), jnp.float32,
                               minval=-bound, maxval=bound)
        b = jax.random.uniform(kb, (1, fan_out), jnp.float32,
                               minval=-bound, maxval=bound)
        return w, b

    w1, b1 = linear(ks[0], ks[1], input_dim, hidden)
    w2, b2 = linear(ks[2], ks[3], hidden, hidden)
    w3, b3 = linear(ks[4], ks[5], hidden, output_dim)
    return {"w1": w1, "b1": b1, "w2": w2, "b2": b2, "w3": w3, "b3": b3}


def qnetwork_ref(x, params):
    """Pure-JAX reference for correctness checking (unpadded math)."""
    h1 = jnp.maximum(x @ params["w1"] + params["b1"], 0.0)
    h2 = jnp.maximum(h1 @ params["w2"] + params["b2"], 0.0)
    return h2 @ params["w3"] + params["b3"]


if __name__ == "__main__":
    key = jax.random.PRNGKey(0)
    k_params, k_x = jax.random.split(key)

    params = init_params(k_params)

    # --- default (bf16-operand) path, B = 8 -------------------------------------
    B = 8
    x = jax.random.uniform(k_x, (B, INPUT_DIM), jnp.float32)  # grid flattened to 100
    ref = qnetwork_ref(x, params)

    prep_bf16 = prepare_params(params)                         # bf16 operands
    out = jax.block_until_ready(qnetwork_forward(x, prep_bf16))
    assert out.shape == (B, OUTPUT_DIM), out.shape
    assert jnp.allclose(out, ref, atol=1e-1, rtol=1e-1), "bf16 mismatch vs reference"

    # --- f32-operand path (default MXU precision), tighter tolerance -------------
    prep_f32 = prepare_params(params, compute_dtype=jnp.float32)
    out_f32 = jax.block_until_ready(qnetwork_forward(x, prep_f32))
    assert out_f32.shape == (B, OUTPUT_DIM), out_f32.shape
    assert jnp.allclose(out_f32, ref, atol=1e-4, rtol=1e-4), "f32 mismatch vs reference"

    # --- multi-step grid + row padding (B not a multiple of the tile) ------------
    B2 = 20
    x2 = jax.random.uniform(k_x, (B2, INPUT_DIM), jnp.float32)
    ref2 = qnetwork_ref(x2, params)
    out2 = jax.block_until_ready(qnetwork_forward(x2, prep_f32, block_b=8))
    assert out2.shape == (B2, OUTPUT_DIM), out2.shape
    assert jnp.allclose(out2, ref2, atol=1e-4, rtol=1e-4), "tiled/padded mismatch"

    print("KERNEL_OK")
</pallas_src>

<mosaic_0001>
module attributes {stable_mosaic.version = 11 : i64} {
  func.func @_qnetwork_kernel(%arg0: i32, %arg1: memref<8x100xf32, #tpu.memory_space<vmem>>, %arg2: memref<100x128xbf16, #tpu.memory_space<vmem>>, %arg3: memref<1x128xf32, #tpu.memory_space<vmem>>, %arg4: memref<128x128xbf16, #tpu.memory_space<vmem>>, %arg5: memref<1x128xf32, #tpu.memory_space<vmem>>, %arg6: memref<128x8xbf16, #tpu.memory_space<vmem>>, %arg7: memref<1x8xf32, #tpu.memory_space<vmem>>, %arg8: memref<8x8xf32, #tpu.memory_space<vmem>>) attributes {dimension_semantics = [#tpu.dimension_semantics<parallel>], iteration_bounds = array<i64: 1>, scalar_prefetch = 0 : i64, scratch_operands = 0 : i64, tpu.core_type = #tpu.core_type<tc>, window_params = [{transform_indices = @transform_0, window_bounds = array<i64: 8, 100>}, {pipeline_mode = #tpu.pipeline_mode<synchronous>, transform_indices = @transform_1, window_bounds = array<i64: 100, 128>}, {pipeline_mode = #tpu.pipeline_mode<synchronous>, transform_indices = @transform_2, window_bounds = array<i64: 1, 128>}, {pipeline_mode = #tpu.pipeline_mode<synchronous>, transform_indices = @transform_3, window_bounds = array<i64: 128, 128>}, {pipeline_mode = #tpu.pipeline_mode<synchronous>, transform_indices = @transform_4, window_bounds = array<i64: 1, 128>}, {pipeline_mode = #tpu.pipeline_mode<synchronous>, transform_indices = @transform_5, window_bounds = array<i64: 128, 8>}, {pipeline_mode = #tpu.pipeline_mode<synchronous>, transform_indices = @transform_6, window_bounds = array<i64: 1, 8>}, {transform_indices = @transform_7, window_bounds = array<i64: 8, 8>}]} {
    %c0 = arith.constant 0 : index
    %c0_0 = arith.constant 0 : index
    %0 = vector.load %arg1[%c0, %c0_0] : memref<8x100xf32, #tpu.memory_space<vmem>>, vector<8x100xf32>
    %1 = arith.truncf %0 : vector<8x100xf32> to vector<8x100xbf16>
    %c0_1 = arith.constant 0 : index
    %c0_2 = arith.constant 0 : index
    %2 = vector.load %arg2[%c0_1, %c0_2] : memref<100x128xbf16, #tpu.memory_space<vmem>>, vector<100x128xbf16>
    %cst = arith.constant dense<0.000000e+00> : vector<8x128xf32>
    %3 = tpu.matmul %1, %2, %cst {dimension_numbers = #tpu.dot_dimension_numbers<[1], [0], [0], [1], [0, 0, 1, 1], [], []>} : vector<8x100xbf16>, vector<100x128xbf16>, vector<8x128xf32> -> vector<8x128xf32>
    %c0_3 = arith.constant 0 : index
    %c0_4 = arith.constant 0 : index
    %4 = vector.load %arg3[%c0_3, %c0_4] : memref<1x128xf32, #tpu.memory_space<vmem>>, vector<1x128xf32>
    %5 = vector.broadcast %4 : vector<1x128xf32> to vector<8x128xf32>
    %6 = arith.addf %3, %5 : vector<8x128xf32>
    %cst_5 = arith.constant 0.000000e+00 : f32
    %7 = vector.broadcast %cst_5 : f32 to vector<8x128xf32>
    %8 = arith.maximumf %6, %7 : vector<8x128xf32>
    %9 = arith.truncf %8 : vector<8x128xf32> to vector<8x128xbf16>
    %c0_6 = arith.constant 0 : index
    %c0_7 = arith.constant 0 : index
    %10 = vector.load %arg4[%c0_6, %c0_7] : memref<128x128xbf16, #tpu.memory_space<vmem>>, vector<128x128xbf16>
    %cst_8 = arith.constant dense<0.000000e+00> : vector<8x128xf32>
    %11 = tpu.matmul %9, %10, %cst_8 {dimension_numbers = #tpu.dot_dimension_numbers<[1], [0], [0], [1], [0, 0, 1, 1], [], []>} : vector<8x128xbf16>, vector<128x128xbf16>, vector<8x128xf32> -> vector<8x128xf32>
    %c0_9 = arith.constant 0 : index
    %c0_10 = arith.constant 0 : index
    %12 = vector.load %arg5[%c0_9, %c0_10] : memref<1x128xf32, #tpu.memory_space<vmem>>, vector<1x128xf32>
    %13 = vector.broadcast %12 : vector<1x128xf32> to vector<8x128xf32>
    %14 = arith.addf %11, %13 : vector<8x128xf32>
    %cst_11 = arith.constant 0.000000e+00 : f32
    %15 = vector.broadcast %cst_11 : f32 to vector<8x128xf32>
    %16 = arith.maximumf %14, %15 : vector<8x128xf32>
    %17 = arith.truncf %16 : vector<8x128xf32> to vector<8x128xbf16>
    %c0_12 = arith.constant 0 : index
    %c0_13 = arith.constant 0 : index
    %18 = vector.load %arg6[%c0_12, %c0_13] : memref<128x8xbf16, #tpu.memory_space<vmem>>, vector<128x8xbf16>
    %cst_14 = arith.constant dense<0.000000e+00> : vector<8x8xf32>
    %19 = tpu.matmul %17, %18, %cst_14 {dimension_numbers = #tpu.dot_dimension_numbers<[1], [0], [0], [1], [0, 0, 1, 1], [], []>} : vector<8x128xbf16>, vector<128x8xbf16>, vector<8x8xf32> -> vector<8x8xf32>
    %c0_15 = arith.constant 0 : index
    %c0_16 = arith.constant 0 : index
    %20 = vector.load %arg7[%c0_15, %c0_16] : memref<1x8xf32, #tpu.memory_space<vmem>>, vector<1x8xf32>
    %21 = vector.broadcast %20 : vector<1x8xf32> to vector<8x8xf32>
    %22 = arith.addf %19, %21 : vector<8x8xf32>
    %c0_17 = arith.constant 0 : index
    %c0_18 = arith.constant 0 : index
    %23 = vector.load %arg8[%c0_17, %c0_18] : memref<8x8xf32, #tpu.memory_space<vmem>>, vector<8x8xf32>
    tpu.vector_store %arg8[%c0_17, %c0_18], %22 {strides = array<i32>} : memref<8x8xf32, #tpu.memory_space<vmem>>, vector<8x8xf32>,
    return
  }
  func.func @transform_0(%arg0: i32) -> (i32, i32) {
    %c0_i32 = arith.constant 0 : i32
    %c0_i32_0 = arith.constant 0 : i32
    return %arg0, %c0_i32 : i32, i32
  }
  func.func @transform_1(%arg0: i32) -> (i32, i32) {
    %c0_i32 = arith.constant 0 : i32
    %c0_i32_0 = arith.constant 0 : i32
    %c0_i32_1 = arith.constant 0 : i32
    return %c0_i32, %c0_i32_0 : i32, i32
  }
  func.func @transform_2(%arg0: i32) -> (i32, i32) {
    %c0_i32 = arith.constant 0 : i32
    %c0_i32_0 = arith.constant 0 : i32
    %c0_i32_1 = arith.constant 0 : i32
    return %c0_i32, %c0_i32_0 : i32, i32
  }
  func.func @transform_3(%arg0: i32) -> (i32, i32) {
    %c0_i32 = arith.constant 0 : i32
    %c0_i32_0 = arith.constant 0 : i32
    %c0_i32_1 = arith.constant 0 : i32
    return %c0_i32, %c0_i32_0 : i32, i32
  }
  func.func @transform_4(%arg0: i32) -> (i32, i32) {
    %c0_i32 = arith.constant 0 : i32
    %c0_i32_0 = arith.constant 0 : i32
    %c0_i32_1 = arith.constant 0 : i32
    return %c0_i32, %c0_i32_0 : i32, i32
  }
  func.func @transform_5(%arg0: i32) -> (i32, i32) {
    %c0_i32 = arith.constant 0 : i32
    %c0_i32_0 = arith.constant 0 : i32
    %c0_i32_1 = arith.constant 0 : i32
    return %c0_i32, %c0_i32_0 : i32, i32
  }
  func.func @transform_6(%arg0: i32) -> (i32, i32) {
    %c0_i32 = arith.constant 0 : i32
    %c0_i32_0 = arith.constant 0 : i32
    %c0_i32_1 = arith.constant 0 : i32
    return %c0_i32, %c0_i32_0 : i32, i32
  }
  func.func @transform_7(%arg0: i32) -> (i32, i32) {
    %c0_i32 = arith.constant 0 : i32
    %c0_i32_0 = arith.constant 0 : i32
    return %arg0, %c0_i32 : i32, i32
  }
}

</mosaic_0001>

<bundles_post_ra>
// kernel: tpu_custom_call.1
= control target key start
LH: loop header
LB: loop body
LE: loop exit
PB: predicated region body
PF: predicated region fallthrough
CT: control target
= control target key end

     0   :  { %12 = vsyncpa [#allocation3], 0  ;;  %s756_s0 = inlined_call_operand.vmem [shape: f32[8,100], index: 0, kind: input, shape index: {}]   ;;  %s757_s1 = inlined_call_operand.hbm [shape: bf16[100,128], index: 1, kind: input, shape index: {}]   ;;  %s758_s2 = inlined_call_operand.vmem [shape: f32[1,128], index: 2, kind: input, shape index: {}]   ;;  %s759_s3 = inlined_call_operand.vmem [shape: bf16[128,128], index: 3, kind: input, shape index: {}]   ;;  %s760_s4 = inlined_call_operand.hbm [shape: f32[1,128], index: 4, kind: input, shape index: {}]   ;;  %s761_s5 = inlined_call_operand.vmem [shape: bf16[128,8], index: 5, kind: input, shape index: {}]   ;;  %s762_s6 = inlined_call_operand.vmem [shape: f32[1,8], index: 6, kind: input, shape index: {}]   ;;  %s763_s7 = inlined_call_operand.hbm [shape: f32[8,8], index: 7, kind: output, shape index: {}]  }
   0x1   :  { %13 = vsyncpa [#allocation6], 0 }
   0x2   :  { %14 = vsyncpa [#allocation4], 0  ;;  %s614_s24 = smov [#allocation2]  }
   0x3   :  { %s22_s25 = sshll.u32 %s614_s24, 4  ;;  %s23_s25 = int_to_ptr.vmem [resolvable:$true] %s22_s25 }
   0x4   :  { %s556_s26 = scalar_lea.vmem %s23_s25, 832  ;;  %p561_p1 = scmp.lt.s32.totalorder %s23_s25, %s23_s25 }
   0x5   :  { %p557_p0 = scmp.ne.s32.totalorder %s23_s25, %s556_s26  ;;  %p562_p2 = scmp.lt.s32.totalorder %s556_s26, %s556_s26 }
   0x7   :  { %p563_p3 = por %p562_p2, %p561_p1 }
   0x9   :  { %p564_p4 = pnand %p563_p3, %p557_p0 }
   0xb   :  { %567 = shalt.err (!%p564_p4)
}
   0xc   :  { %s615_s27 = smov 64   ;;  %s616_s28 = smov 4  }
   0xd   :  { %28 = dma.hbm_to_vmem [thread:$0]  %s757_s1, 832, %s23_s25, [#allocation3], %s615_s27, %s615_s27, %s616_s28  }
   0xe   :  { %s617_s8 = smov [#allocation5]  }
   0xf   :  { %s39_s9 = sshll.u32 %s617_s8, 4  ;;  %s40_s9 = int_to_ptr.vmem [resolvable:$true] %s39_s9 }
  0x10   :  { %s576_s10 = scalar_lea.vmem %s40_s9, 16  ;;  %s580_s11 = scalar_lea.vmem %s40_s9, 32 }
  0x11   :  { %p577_p5 = scmp.ne.s32.totalorder %s40_s9, %s576_s10  ;;  %p581_p6 = scmp.lt.s32.totalorder %s40_s9, %s40_s9 }
  0x12   :  { %p582_p7 = scmp.lt.s32.totalorder %s580_s11, %s576_s10 }
  0x14   :  { %p583_p8 = por %p582_p7, %p581_p6 }
  0x16   :  { %p584_p9 = pnand %p583_p8, %p577_p5 }
  0x18   :  { %587 = shalt.err (!%p584_p9)
}
  0x19   :  { %42 = dma.hbm_to_vmem [thread:$0]  %s760_s4, 16, %s40_s9, [#allocation6]  }
  0x1a   :  { %608 = dma.done.wait [#allocation3], 832  }
  0x1b   :  { %609 = vsyncadd [#allocation3], 4294966464 }
  0x1c   :  { %610 = dma.done.wait [#allocation6], 16  }
  0x1d   :  { %611 = vsyncadd [#allocation6], 4294967280  ;;  %v618_v0 = vmov 0.0   ;;  %vm619_vm0 = vmmov 0   ;;  %vm119_vm1 = vcmask 1041408   ;;  %v526_v3 = vld [vmem:[#allocation2 + $0x28] sm:$0xff]  }
  0x1e   :  { %460 = vmatprep.subr.bf16.mxu0 %v618_v0  ;;  %474 = vmatprep.mubr.msk.bf16.mxu0 %vm619_vm0, %v618_v0  ;;  %v525_v1 = vld [vmem:[#allocation2 + $0x30] ss:$0 sps:$4 sm:$0x33]   ;;  %v527_v4 = vld [vmem:[#allocation2 + $0x20] sm:$0xff]   ;;  %v532_v5 = vld [vmem:[%s759_s3 + $0x38] sm:$0xff]   ;;  %vm115_vm2 = vcmask 818176  }
  0x1f   :  { %478 = vmatprep.subr.bf16.mxu1 %v618_v0  ;;  %494 = vmatprep.mubr.msk.bf16.mxu1 %vm619_vm0, %v618_v0  ;;  %v121_v2 = vsel %vm119_vm1, %v525_v1, 0  ;;  %v533_v6 = vld [vmem:[%s759_s3 + $0x30] sm:$0xff]   ;;  %v528_v7 = vld [vmem:[#allocation2 + $0x18] sm:$0xff]   ;;  %v534_v9 = vld [vmem:[%s759_s3 + $0x28] sm:$0xff]   ;;  %s620_s22 = smov [#allocation7]   ;;  %vm389_vm3 = vcmask 64512  }
  0x20   :  { %461 = vmatpush3.bf16.msra.mxu0 %v121_v2  ;;  %479 = vmatpush3.bf16.msra.mxu1 %v532_v5  ;;  %v529_v8 = vld [vmem:[#allocation2 + $0x10] sm:$0xff]   ;;  %v535_v10 = vld [vmem:[%s759_s3 + $0x20] sm:$0xff]   ;;  %v530_v11 = vld [vmem:[#allocation2 + $0x8] sm:$0xff]   ;;  %s397_s23 = sshll.u32 %s620_s22, 4  ;;  %s398_s23 = int_to_ptr.vmem [resolvable:$true] %s397_s23 }
  0x21   :  { %462 = vmatprep.subr.bf16.mxu0 %v618_v0  ;;  %480 = vmatprep.subr.bf16.mxu1 %v618_v0  ;;  %v536_v12 = vld [vmem:[%s759_s3 + $0x18] sm:$0xff]   ;;  %v531_v13 = vld [vmem:[#allocation2] sm:$0xff]   ;;  %v537_v15 = vld [vmem:[%s759_s3 + $0x10] sm:$0xff]   ;;  %p593_p11 = scmp.lt.s32.totalorder %s398_s23, %s398_s23 }
  0x22   :  { %v54_v14 = vld [vmem:[%s756_s0] sm:$0xff]  ;;  %v538_v17 = vld [vmem:[%s759_s3 + $0x8] sm:$0xff]   ;;  %v540_v19 = vld [vmem:[%s761_s5 + $0x38] sm:$0xff]  }
  0x23   :  { %v55_v16 = vpack.c.bf16 %v54_v14, %v54_v14  ;;  %v539_v18 = vld [vmem:[%s759_s3] sm:$0xff]   ;;  %v541_v20 = vld [vmem:[%s761_s5 + $0x30] sm:$0xff]   ;;  %v542_v21 = vld [vmem:[%s761_s5 + $0x28] sm:$0xff]  }
  0x24   :  { %463 = vmatpush3.bf16.msra.mxu0 %v526_v3  ;;  %481 = vmatpush3.bf16.msra.mxu1 %v533_v6  ;;  %v543_v22 = vld [vmem:[%s761_s5 + $0x20] sm:$0xff]   ;;  %v544_v23 = vld [vmem:[%s761_s5 + $0x18] sm:$0xff]   ;;  %v545_v24 = vld [vmem:[%s761_s5 + $0x10] sm:$0xff]  }
  0x25   :  { %464 = vmatprep.subr.bf16.mxu0 %v618_v0  ;;  %482 = vmatprep.subr.bf16.mxu1 %v618_v0  ;;  %v407_v25 = vld [vmem:[%s758_s2] ss:$0 sm:$0xff]  ;;  %v546_v33 = vld [vmem:[%s761_s5 + $0x8] sm:$0xff]   ;;  %v416_v35 = vld [vmem:[#allocation5] ss:$0 sm:$0xff] }
  0x26   :  { %v547_v34 = vld [vmem:[%s761_s5] sm:$0xff]   ;;  %s588_s5 = scalar_lea.vmem %s398_s23, 128 }
  0x27   :  { %v425_v43 = vld [vmem:[%s762_s6] ss:$0 sm:$0xff]  ;;  %p589_p10 = scmp.ne.s32.totalorder %s398_s23, %s588_s5  ;;  %p594_p12 = scmp.lt.s32.totalorder %s588_s5, %s588_s5 }
  0x28   :  { %465 = vmatpush3.bf16.msra.mxu0 %v527_v4  ;;  %483 = vmatpush3.bf16.msra.mxu1 %v534_v9 }
  0x29   :  { %466 = vmatprep.subr.bf16.mxu0 %v618_v0  ;;  %484 = vmatprep.subr.bf16.mxu1 %v618_v0  ;;  %p595_p13 = por %p594_p12, %p593_p11 }
  0x2b   :  { %p596_p0 = pnand %p595_p13, %p589_p10 }
  0x2c   :  { %467 = vmatpush3.bf16.msra.mxu0 %v528_v7  ;;  %485 = vmatpush3.bf16.msra.mxu1 %v535_v10 }
  0x2d   :  { %468 = vmatprep.subr.bf16.mxu0 %v618_v0  ;;  %486 = vmatprep.subr.bf16.mxu1 %v618_v0 }
  0x30   :  { %469 = vmatpush3.bf16.msra.mxu0 %v529_v8  ;;  %487 = vmatpush3.bf16.msra.mxu1 %v536_v12 }
  0x31   :  { %470 = vmatprep.subr.bf16.mxu0 %v618_v0  ;;  %488 = vmatprep.subr.bf16.mxu1 %v618_v0 }
  0x34   :  { %471 = vmatpush3.bf16.msra.mxu0 %v530_v11  ;;  %489 = vmatpush3.bf16.msra.mxu1 %v537_v15 }
  0x35   :  { %472 = vmatprep.subr.bf16.mxu0 %v618_v0  ;;  %490 = vmatprep.subr.bf16.mxu1 %v618_v0 }
  0x38   :  { %473 = vmatpush3.bf16.msra.mxu0 %v531_v13  ;;  %491 = vmatpush3.bf16.msra.mxu1 %v538_v17 }
  0x39   :  { %498 = vmatprep.subr.bf16.mxu0 %v618_v0  ;;  %492 = vmatprep.subr.bf16.mxu1 %v618_v0 }
  0x3b   :  { %475 = vmatmul.mubr.msk.bf16.vlgmr.msra.gmra.mxu0 %vm115_vm2, %v55_v16 }
  0x3c   :  { %514 = vmatprep.mubr.msk.bf16.mxu0 %vm619_vm0, %v618_v0  ;;  %493 = vmatpush3.bf16.msra.mxu1 %v539_v18 }
  0x3d   :  { %499 = vmatpush3.bf16.msra.mxu0 %v540_v19 }
  0x3e   :  { %500 = vmatprep.subr.bf16.mxu0 %v618_v0 }
  0x41   :  { %501 = vmatpush3.bf16.msra.mxu0 %v541_v20 }
  0x42   :  { %502 = vmatprep.subr.bf16.mxu0 %v618_v0 }
  0x45   :  { %503 = vmatpush3.bf16.msra.mxu0 %v542_v21 }
  0x46   :  { %504 = vmatprep.subr.bf16.mxu0 %v618_v0 }
  0x49   :  { %505 = vmatpush3.bf16.msra.mxu0 %v543_v22 }
  0x4a   :  { %506 = vmatprep.subr.bf16.mxu0 %v618_v0 }
  0x4d   :  { %507 = vmatpush3.bf16.msra.mxu0 %v544_v23 }
  0x4e   :  { %508 = vmatprep.subr.bf16.mxu0 %v618_v0 }
  0x51   :  { %509 = vmatpush3.bf16.msra.mxu0 %v545_v24 }
  0x52   :  { %510 = vmatprep.subr.bf16.mxu0 %v618_v0 }
  0x55   :  { %511 = vmatpush3.bf16.msra.mxu0 %v546_v33 }
  0x56   :  { %512 = vmatprep.subr.bf16.mxu0 %v618_v0 }
  0x59   :  { %513 = vmatpush3.bf16.msra.mxu0 %v547_v34 }
  0xfb   :  { %v157_v26 = vpop.f32.mrf.mxu0 }
  0xfc   :  { %v158_v27 = vadd.f32 %v407_v25, %v157_v26 }
  0xfd   :  { %v476_v28 = vpop.f32.mrf.mxu0 }
  0xfe   :  { %v163_v29 = vmax.f32 %v158_v27, 0.0 }
  0xff   :  { %v160_v30 = vpop.f32.mrf.mxu0 }
 0x100   :  { %v164_v31 = vpack.c.bf16 %v163_v29, %v163_v29 }
 0x101   :  { %v477_v32 = vpop.f32.mrf.mxu0 }
 0x102   :  { %495 = vmatmul.mubr.bf16.vlgmr.msra.gmra.mxu1 %v164_v31 }
 0x1c2   :  { %v270_v36 = vpop.f32.mrf.mxu1 }
 0x1c3   :  { %v271_v37 = vadd.f32 %v416_v35, %v270_v36 }
 0x1c4   :  { %v496_v38 = vpop.f32.mrf.mxu1 }
 0x1c5   :  { %v276_v39 = vmax.f32 %v271_v37, 0.0 }
 0x1c6   :  { %v273_v40 = vpop.f32.mrf.mxu1 }
 0x1c7   :  { %v277_v41 = vpack.c.bf16 %v276_v39, %v276_v39 }
 0x1c8   :  { %v497_v42 = vpop.f32.mrf.mxu1 }
 0x1c9   :  { %515 = vmatmul.mubr.bf16.vlgmr.msra.gmra.mxu0 %v277_v41 }
 0x289   :  { %v383_v44 = vpop.f32.mrf.mxu0 }
 0x28a   :  { %v384_v45 = vadd.f32 %v425_v43, %v383_v44 }
 0x28b   :  { %v516_v46 = vpop.f32.mrf.mxu0 }
 0x28c   :  { %390 = vst.msk [vmem:[#allocation7] sm:$0xff] %vm389_vm3, %v384_v45 }
 0x28d   :  { %v386_v47 = vpop.f32.mrf.mxu0 }
 0x28e   :  { %599 = shalt.err (!%p596_p0)
}
 0x28f   :  { %400 = dma.vmem_to_hbm [thread:$0]  %s398_s23, 128, %s763_s7, [#allocation4]   ;;  %v517_v48 = vpop.f32.mrf.mxu0 }
 0x290   :  { %612 = dma.done.wait [#allocation4], 128  }
 0x291   :  { %613 = vsyncadd [#allocation4], 4294967168 }
 0x292   :  { %404 = vsyncpa [#allocation3], 1 }
 0x293   :  { %405 = vsyncpa [#allocation6], 1 }
 0x294   :  { %406 = vsyncpa [#allocation4], 1 }

</bundles_post_ra>
